<compile_context>
chip_gen: v5e
topology: v5e:2x2
jax: 0.10.0
libtpu: 0.0.40
codegen_flags: <defaults>
</compile_context>

<pallas_src>
import jax
import jax.numpy as jnp
from jax import lax
from jax.experimental import pallas as pl
from jax.experimental.pallas import tpu as pltpu


def _round_up(n, m):
    return ((n + m - 1) // m) * m


def der_kernel(x_ref, o_ref):
    # x_ref/o_ref: (4, bb) tile — channels on sublanes, batch on lanes.
    x = x_ref[...].astype(jnp.float32)

    # Numerically stable softplus on the whole tile (redundant work on the
    # gamma row is free: EUP is not the binding slot for this mem-bound op).
    sp = jnp.maximum(x, 0.0) + jnp.log1p(jnp.exp(-jnp.abs(x)))

    # Select per channel-row with full-tile VPU selects (no concatenate,
    # no sub-vreg slices, single unmasked lane-dense store).
    row = lax.broadcasted_iota(jnp.int32, x.shape, 0)
    out = jnp.where(row == 0, x,                      # gamma  (identity)
          jnp.where(row == 2, sp + 1.0,               # alpha  (softplus + 1)
                    sp))                              # nu, beta (softplus)

    o_ref[...] = out.astype(o_ref.dtype)


def der_layer(x, *, max_block_b=2048):
    """x: (B, 4) float array -> (B, 4) float array, DERLayer.forward semantics."""
    assert x.ndim == 2 and x.shape[1] == 4, "expected (B, 4) input"
    B = x.shape[0]

    # Transpose so batch is the lane (fast) axis: (4, B).
    xt = x.T

    # Lane-dense block: multiple of 128, capped at max_block_b lanes.
    bb = min(max_block_b, _round_up(B, 128))
    Bp = _round_up(B, bb)
    if Bp != B:
        xt = jnp.pad(xt, ((0, 0), (0, Bp - B)))

    out_t = pl.pallas_call(
        der_kernel,
        out_shape=jax.ShapeDtypeStruct((4, Bp), x.dtype),
        grid=(Bp // bb,),
        in_specs=[pl.BlockSpec((4, bb), lambda i: (0, i))],
        out_specs=pl.BlockSpec((4, bb), lambda i: (0, i)),
        compiler_params=pltpu.CompilerParams(
            dimension_semantics=("parallel",),
        ),
    )(xt)

    # Drop padding, restore (B, 4) channel-last layout.
    return out_t[:, :B].T


def der_reference(x):
    gamma = x[:, 0]
    nu = jax.nn.softplus(x[:, 1])
    alpha = jax.nn.softplus(x[:, 2]) + 1.0
    beta = jax.nn.softplus(x[:, 3])
    return jnp.stack((gamma, nu, alpha, beta), axis=1)


if __name__ == "__main__":
    key = jax.random.PRNGKey(0)
    B = 8
    x = jax.random.normal(key, (B, 4), dtype=jnp.float32) * 3.0

    out = der_layer(x)
    jax.block_until_ready(out)

    ref = der_reference(x)
    assert out.shape == (B, 4)
    assert jnp.allclose(out, ref, atol=1e-5, rtol=1e-5), (out, ref)

    print("KERNEL_OK")
</pallas_src>

<mosaic_0001>
module attributes {stable_mosaic.version = 11 : i64} {
  func.func @der_kernel(%arg0: i32, %arg1: memref<4x128xf32, #tpu.memory_space<vmem>>, %arg2: memref<4x128xf32, #tpu.memory_space<vmem>>) attributes {dimension_semantics = [#tpu.dimension_semantics<parallel>], iteration_bounds = array<i64: 1>, scalar_prefetch = 0 : i64, scratch_operands = 0 : i64, tpu.core_type = #tpu.core_type<tc>, window_params = [{transform_indices = @transform_0, window_bounds = array<i64: 4, 128>}, {transform_indices = @transform_1, window_bounds = array<i64: 4, 128>}]} {
    %c0 = arith.constant 0 : index
    %c0_0 = arith.constant 0 : index
    %0 = vector.load %arg1[%c0, %c0_0] : memref<4x128xf32, #tpu.memory_space<vmem>>, vector<4x128xf32>
    %cst = arith.constant 0.000000e+00 : f32
    %1 = vector.broadcast %cst : f32 to vector<4x128xf32>
    %2 = arith.maximumf %0, %1 : vector<4x128xf32>
    %3 = math.absf %0 : vector<4x128xf32>
    %cst_1 = arith.constant 0.000000e+00 : f32
    %4 = vector.broadcast %cst_1 : f32 to vector<4x128xf32>
    %5 = arith.subf %4, %3 : vector<4x128xf32>
    %6 = math.exp %5 : vector<4x128xf32>
    %7 = math.log1p %6 : vector<4x128xf32>
    %8 = arith.addf %2, %7 : vector<4x128xf32>
    %9 = tpu.iota {dimensions = array<i32: 0>} : vector<4x128xi32>
    %c0_i32 = arith.constant 0 : i32
    %10 = vector.broadcast %c0_i32 : i32 to vector<4x128xi32>
    %11 = arith.cmpi eq, %9, %10 : vector<4x128xi32>
    %c2_i32 = arith.constant 2 : i32
    %12 = vector.broadcast %c2_i32 : i32 to vector<4x128xi32>
    %13 = arith.cmpi eq, %9, %12 : vector<4x128xi32>
    %cst_2 = arith.constant 1.000000e+00 : f32
    %14 = vector.broadcast %cst_2 : f32 to vector<4x128xf32>
    %15 = arith.addf %8, %14 : vector<4x128xf32>
    %16 = arith.select %13, %15, %8 : vector<4x128xi1>, vector<4x128xf32>
    %17 = arith.select %11, %0, %16 : vector<4x128xi1>, vector<4x128xf32>
    %c0_3 = arith.constant 0 : index
    %c0_4 = arith.constant 0 : index
    %18 = vector.load %arg2[%c0_3, %c0_4] : memref<4x128xf32, #tpu.memory_space<vmem>>, vector<4x128xf32>
    tpu.vector_store %arg2[%c0_3, %c0_4], %17 {strides = array<i32>} : memref<4x128xf32, #tpu.memory_space<vmem>>, vector<4x128xf32>,
    return
  }
  func.func @transform_0(%arg0: i32) -> (i32, i32) {
    %c0_i32 = arith.constant 0 : i32
    %c0_i32_0 = arith.constant 0 : i32
    return %c0_i32, %arg0 : i32, i32
  }
  func.func @transform_1(%arg0: i32) -> (i32, i32) {
    %c0_i32 = arith.constant 0 : i32
    %c0_i32_0 = arith.constant 0 : i32
    return %c0_i32, %arg0 : i32, i32
  }
}

</mosaic_0001>

<bundles_post_ra>
// kernel: tpu_custom_call.1
= control target key start
LH: loop header
LB: loop body
LE: loop exit
PB: predicated region body
PF: predicated region fallthrough
CT: control target
= control target key end

     0   :  { %6 = vsyncpa [#allocation3], 0  ;;  %s140_s0 = inlined_call_operand.hbm [shape: f32[4,128], index: 0, kind: input, shape index: {}]   ;;  %s141_s1 = inlined_call_operand.hbm [shape: f32[4,128], index: 1, kind: output, shape index: {}]  }
   0x1   :  { %7 = vsyncpa [#allocation4], 0  ;;  %s13_s8 = sshll.u32 %s140_s0, 4  ;;  %s122_s9 = smov [#allocation2]   ;;  %s14_s8 = int_to_ptr.hbm [resolvable:$true] %s13_s8 }
   0x2   :  { %s15_s10 = sshll.u32 %s122_s9, 4  ;;  %s16_s10 = int_to_ptr.vmem [resolvable:$true] %s15_s10 }
   0x3   :  { %18 = dma.hbm_to_vmem [thread:$0]  %s14_s8, 64, %s16_s10, [#allocation3]  }
   0x4   :  { %118 = dma.done.wait [#allocation3], 64  }
   0x5   :  { %119 = vsyncadd [#allocation3], 4294967232  ;;  %v23_v0 = vld [vmem:[#allocation2] sm:$0xf]  ;;  %v39_v9 = vlaneseq  ;;  %s123_s0 = smov [#allocation5]   ;;  %s54_s14 = sshll.u32 %s141_s1, 4  ;;  %s55_s14 = int_to_ptr.hbm [resolvable:$true] %s54_s14 }
   0x6   :  { %v25_v1 = vand.u32 2147483647, %v23_v0  ;;  %v24_v12 = vmax.f32 %v23_v0, 0.0  ;;  %s52_s11 = sshll.u32 %s123_s0, 4  ;;  %s53_s11 = int_to_ptr.vmem [resolvable:$true] %s52_s11 }
   0x7   :  { %v40_v14 = vshrl.u32 %v39_v9, 7 }
   0x8   :  { %v26_v2 = vsub.f32 0.0, %v25_v1 }
   0x9   :  { %vm42_vm1 = vcmp.eq.s32.totalorder %v40_v14, 2  ;;  %vm41_vm2 = vcmp.eq.s32.totalorder %v40_v14, 0 }
   0xa   :  { %v27_v3 = vmul.f32 1.442695, %v26_v2 }
   0xc   :  { %66 = vpow2.f32 %v27_v3 }
  0x12   :  { %v67_v4 = vpop.eup %66 }
  0x13   :  { %v29_v5 = vadd.f32 1.0, %v67_v4  ;;  %v32_v6 = vmul.f32 -0.5, %v67_v4  ;;  %v35_v8 = vand.u32 2147483647, %v67_v4 }
  0x15   :  { %68 = vlog2.f32 %v29_v5  ;;  %v33_v7 = vadd.f32 1.0, %v32_v6  ;;  %vm36_vm0 = vcmp.lt.f32.partialorder %v35_v8, 0.0004427343 }
  0x17   :  { %v34_v10 = vmul.f32 %v67_v4, %v33_v7 }
  0x1b   :  { %v69_v11 = vpop.eup %68 }
  0x1c   :  { %v31_v13 = vmul.f32 0.6931472, %v69_v11 }
  0x1e   :  { %v37_v15 = vsel %vm36_vm0, %v34_v10, %v31_v13 }
  0x1f   :  { %v38_v16 = vadd.f32 %v37_v15, %v24_v12 }
  0x21   :  { %v43_v17 = vadd.f32 1.0, %v38_v16 }
  0x23   :  { %v44_v18 = vsel %vm42_vm1, %v43_v17, %v38_v16 }
  0x24   :  { %v45_v19 = vsel %vm41_vm2, %v23_v0, %v44_v18 }
  0x25   :  { %46 = vst [vmem:[#allocation5] sm:$0xf] %v45_v19 }
  0x26   :  { %57 = dma.vmem_to_hbm [thread:$0]  %s53_s11, 64, %s55_s14, [#allocation4]  }
  0x27   :  { %120 = dma.done.wait [#allocation4], 64  }
  0x28   :  { %121 = vsyncadd [#allocation4], 4294967232 }
  0x29   :  { %62 = vsyncpa [#allocation3], 1 }
  0x2a   :  { %63 = vsyncpa [#allocation4], 1 }

</bundles_post_ra>
